<compile_context>
chip_gen: v5e
topology: v5e:2x2
jax: 0.10.0
libtpu: 0.0.40
codegen_flags: <defaults>
</compile_context>

<pallas_src>
import jax
import jax.numpy as jnp
from jax.experimental import pallas as pl
from jax.experimental.pallas import tpu as pltpu

LN_EPS = 1e-5  # torch.nn.LayerNorm default


def _round_up(x, m):
    return (x + m - 1) // m * m


def _cdiv(a, b):
    return (a + b - 1) // b


# --------------------------- fused merge + LayerNorm + matmul (fast path) ---------------------------

def _fused_kernel(xt_ref, xb_ref, wt_ref, wb_ref, b_ref, o_ref):
    # xt_ref / xb_ref: (t_r, L2, 2C) lat-parity-0 / lat-parity-1 half rows (channel order [lo0|lo1],
    #                  so concat(top, bottom) is exactly the torch merged 4C vector).
    # wt_ref / wb_ref: (2C, 2Cout) bf16 weight halves with gamma pre-folded (resident in VMEM).
    # b_ref:           (1, 2Cout) f32 bias = beta @ W (resident).
    # o_ref:           (t_r*L2, 2Cout).
    xt = xt_ref[...].astype(jnp.float32)
    xb = xb_ref[...].astype(jnp.float32)
    c2 = xt.shape[-1]
    inv_c4 = jnp.float32(1.0 / (2 * c2))
    s1 = jnp.sum(xt, axis=-1, keepdims=True) + jnp.sum(xb, axis=-1, keepdims=True)
    s2 = jnp.sum(xt * xt, axis=-1, keepdims=True) + jnp.sum(xb * xb, axis=-1, keepdims=True)
    mean = s1 * inv_c4
    var = s2 * inv_c4 - mean * mean            # E[x^2] - mean^2, f32 (single pass over x)
    inv_std = jax.lax.rsqrt(var + LN_EPS)       # EUP
    yt = (xt - mean) * inv_std                  # (t_r, L2, 2C) f32
    yb = (xb - mean) * inv_std
    t_r, l2, _ = yt.shape
    # Collapse (t_r, L2, 2C) -> (t_r*L2, 2C). Tile-aligned no-op because the caller guarantees
    # L2 % 8 == 0 (f32 sublane tiling), done before the bf16 cast.
    yt2 = yt.reshape(t_r * l2, c2).astype(jnp.bfloat16)
    yb2 = yb.reshape(t_r * l2, c2).astype(jnp.bfloat16)
    acc = jnp.dot(yt2, wt_ref[...], preferred_element_type=jnp.float32)
    acc = acc + jnp.dot(yb2, wb_ref[...], preferred_element_type=jnp.float32)
    o_ref[...] = (acc + b_ref[...]).astype(o_ref.dtype)


def _fused_ln_linear(x_half, w_bf16, bias_f32, *, token_tile=2048):
    """x_half: (R, 2, L2, 2C) with L2 % 8 == 0  ->  (R*L2, 2Cout)."""
    R, _, L2, C2 = x_half.shape
    C4 = 2 * C2
    C2o = w_bf16.shape[1]
    N = R * L2

    # Rows (over R) per grid step: target ~token_tile tokens/step, keep >= 2 grid blocks when
    # possible (v7x megacore: 2 TensorCores), and stay inside a conservative VMEM budget
    # (v7x only has 64 MiB per core; inputs/outputs are double-buffered by the pipeline).
    t_r = max(1, token_tile // L2)
    if R >= 2:
        t_r = min(t_r, _cdiv(R, 2))
    t_r = min(t_r, R)
    itm = x_half.dtype.itemsize
    per_row_bytes = 2 * (2 * L2 * C2 * itm) + 2 * (L2 * C2o * itm)  # 2 halves + output, x2 buffers
    t_r = max(1, min(t_r, (40 * 1024 * 1024) // max(per_row_bytes, 1)))

    grid = (_cdiv(R, t_r),)

    cost = pl.CostEstimate(
        flops=2 * N * C4 * C2o,
        transcendentals=N,  # one rsqrt per token
        bytes_accessed=N * C4 * itm + N * C2o * itm + C4 * C2o * 2 + C2o * 4,
    )

    wt = w_bf16[:C2, :]   # top half: la0 (lo0|lo1) channels
    wb = w_bf16[C2:, :]   # bottom half: la1 (lo0|lo1) channels

    return pl.pallas_call(
        _fused_kernel,
        out_shape=jax.ShapeDtypeStruct((N, C2o), x_half.dtype),
        grid_spec=pltpu.PrefetchScalarGridSpec(
            num_scalar_prefetch=0,
            grid=grid,
            in_specs=[
                pl.BlockSpec((t_r, None, L2, C2), lambda i: (i, 0, 0, 0)),  # lat-parity 0
                pl.BlockSpec((t_r, None, L2, C2), lambda i: (i, 1, 0, 0)),  # lat-parity 1
                pl.BlockSpec((C2, C2o), lambda i: (0, 0)),                  # resident bf16 weight (top)
                pl.BlockSpec((C2, C2o), lambda i: (0, 0)),                  # resident bf16 weight (bottom)
                pl.BlockSpec((1, C2o), lambda i: (0, 0)),                   # resident f32 bias
            ],
            out_specs=pl.BlockSpec((t_r * L2, C2o), lambda i: (i, 0)),
        ),
        compiler_params=pltpu.CompilerParams(
            dimension_semantics=("parallel",),          # independent token blocks -> 2-TC shard
            vmem_limit_bytes=48 * 1024 * 1024,
        ),
        cost_estimate=cost,
    )(x_half, x_half, wt, wb, bias_f32)


# ------------------- fallback: pre-merged (N, 4C) rows -> LayerNorm + matmul kernel -------------------

def _rows_kernel(x_ref, w_ref, b_ref, o_ref):
    # x_ref: (tm, 4C) merged rows; w_ref: (4C, 2Cout) bf16 (gamma folded); b_ref: (1, 2Cout) f32.
    x = x_ref[...].astype(jnp.float32)
    c4 = x.shape[-1]
    inv_c4 = jnp.float32(1.0 / c4)
    mean = jnp.sum(x, axis=-1, keepdims=True) * inv_c4
    var = jnp.sum(x * x, axis=-1, keepdims=True) * inv_c4 - mean * mean
    inv_std = jax.lax.rsqrt(var + LN_EPS)
    y = ((x - mean) * inv_std).astype(jnp.bfloat16)
    acc = jnp.dot(y, w_ref[...], preferred_element_type=jnp.float32)
    o_ref[...] = (acc + b_ref[...]).astype(o_ref.dtype)


def _rows_ln_linear(x2d, w_bf16, bias_f32, *, tm=2048):
    """x2d: (N, 4C) -> (N, 2Cout). Ragged N handled by Pallas partial edge blocks (row-wise ops only)."""
    N, C4 = x2d.shape
    C2o = w_bf16.shape[1]
    tm = max(8, min(tm, _round_up(N, 8)))
    if N > 8:
        tm = min(tm, _round_up(_cdiv(N, 2), 8))   # keep >= 2 grid blocks for v7x's 2 TensorCores
    grid = (_cdiv(N, tm),)
    itm = x2d.dtype.itemsize
    cost = pl.CostEstimate(
        flops=2 * N * C4 * C2o,
        transcendentals=N,
        bytes_accessed=N * C4 * itm + N * C2o * itm + C4 * C2o * 2 + C2o * 4,
    )
    return pl.pallas_call(
        _rows_kernel,
        out_shape=jax.ShapeDtypeStruct((N, C2o), x2d.dtype),
        grid_spec=pltpu.PrefetchScalarGridSpec(
            num_scalar_prefetch=0,
            grid=grid,
            in_specs=[
                pl.BlockSpec((tm, C4), lambda i: (i, 0)),
                pl.BlockSpec((C4, C2o), lambda i: (0, 0)),
                pl.BlockSpec((1, C2o), lambda i: (0, 0)),
            ],
            out_specs=pl.BlockSpec((tm, C2o), lambda i: (i, 0)),
        ),
        compiler_params=pltpu.CompilerParams(
            dimension_semantics=("parallel",),
            vmem_limit_bytes=48 * 1024 * 1024,
        ),
        cost_estimate=cost,
    )(x2d, w_bf16, bias_f32)


# ------------------------------------------ forward pass ------------------------------------------

def downsample_forward(x, n_patch_vert, n_patch_lat, n_patch_lon, params,
                       downsampling=(2, 2), token_tile=2048):
    """Mirror of DownSample.forward.

    x: (B, n_patch_vert, n_patch_lat, n_patch_lon, C) (or any view reshapable to it)
    returns: (B, n_patch_vert * (Lat_pad//2) * (Lon_pad//2), 2*C)
    """
    B = x.shape[0]
    C = x.shape[-1]
    x = x.reshape(B, n_patch_vert, n_patch_lat, n_patch_lon, C)

    d0, d1 = downsampling
    y_tot = (d0 - x.shape[2] % d0) % d0
    y1, y2 = y_tot // 2, y_tot - y_tot // 2
    z_tot = (d1 - x.shape[3] % d1) % d1
    z1, z2 = z_tot // 2, z_tot - z_tot // 2
    if y_tot or z_tot:
        # TODO(synk): fold the ragged lat/lon edge into the fused kernel (masked contribution)
        # instead of materializing a padded copy in HBM.
        x = jnp.pad(x, ((0, 0), (0, 0), (y1, y2), (z1, z2), (0, 0)),
                    mode="constant", constant_values=0)

    V, Lat, Lon = x.shape[1], x.shape[2], x.shape[3]
    L2 = Lon // 2
    R = B * V * (Lat // 2)
    N = R * L2
    C2, C4 = 2 * C, 4 * C
    C2o = params["w_t"].shape[1]

    # Fold the LayerNorm affine into the matmul: (xhat*gamma + beta) @ W == xhat @ (gamma*W) + beta@W.
    gamma = params["ln_gamma"].astype(jnp.float32)
    beta = params["ln_beta"].astype(jnp.float32)
    w_f32 = params["w_t"].astype(jnp.float32)                       # (4C, 2C)
    w_bf16 = (gamma[:, None] * w_f32).astype(jnp.bfloat16)
    bias_f32 = (beta @ w_f32).reshape(1, C2o).astype(jnp.float32)

    if L2 % 8 == 0:
        # Fast path: only free (bitcast) reshapes — no HBM transpose. Lat-parity becomes a size-2
        # axis that the kernel's BlockSpecs pin to 0 / 1.
        x_half = x.reshape(R, 2, L2, C2)
        out2d = _fused_ln_linear(x_half, w_bf16, bias_f32, token_tile=token_tile)
    else:
        # Fallback: materialize the 2x2 merge with XLA (exact torch reshape/permute/reshape order).
        xm = x.reshape(B, V, Lat // 2, 2, L2, 2, C)
        xm = jnp.transpose(xm, (0, 1, 2, 4, 3, 5, 6))
        x2d = xm.reshape(N, C4)
        out2d = _rows_ln_linear(x2d, w_bf16, bias_f32, tm=token_tile)

    return out2d.reshape(B, V * (Lat // 2) * L2, C2o)


def init_params(dim, key):
    k1, k2, k3 = jax.random.split(key, 3)
    # Linear(4*dim, 2*dim, bias=False): torch weight is (2*dim, 4*dim); we store its transpose.
    w = jax.random.normal(k1, (2 * dim, 4 * dim), dtype=jnp.float32) * 0.02
    # torch LayerNorm default init is ones/zeros; randomized here to exercise the folded affine.
    return {
        "w_t": jnp.transpose(w),                                              # (4*dim, 2*dim)
        "ln_gamma": 1.0 + 0.1 * jax.random.normal(k2, (4 * dim,), jnp.float32),
        "ln_beta": 0.05 * jax.random.normal(k3, (4 * dim,), jnp.float32),
    }


def _reference(x, n_patch_vert, n_patch_lat, n_patch_lon, params, downsampling=(2, 2)):
    # Pure-JAX f32 reference mirroring the torch module (including padding).
    B, C = x.shape[0], x.shape[-1]
    x = x.reshape(B, n_patch_vert, n_patch_lat, n_patch_lon, C).astype(jnp.float32)
    d0, d1 = downsampling
    y_tot = (d0 - x.shape[2] % d0) % d0
    z_tot = (d1 - x.shape[3] % d1) % d1
    y1, y2 = y_tot // 2, y_tot - y_tot // 2
    z1, z2 = z_tot // 2, z_tot - z_tot // 2
    if y_tot or z_tot:
        x = jnp.pad(x, ((0, 0), (0, 0), (y1, y2), (z1, z2), (0, 0)))
    V, Lat, Lon = x.shape[1], x.shape[2], x.shape[3]
    x = x.reshape(B, V, Lat // 2, 2, Lon // 2, 2, C)
    x = jnp.transpose(x, (0, 1, 2, 4, 3, 5, 6))
    x = x.reshape(B, V * (Lat // 2) * (Lon // 2), 4 * C)
    mean = jnp.mean(x, axis=-1, keepdims=True)
    var = jnp.mean((x - mean) ** 2, axis=-1, keepdims=True)
    xn = (x - mean) / jnp.sqrt(var + LN_EPS)
    xn = xn * params["ln_gamma"] + params["ln_beta"]
    return xn @ params["w_t"].astype(jnp.float32)


if __name__ == "__main__":
    key = jax.random.PRNGKey(0)

    def run_case(B, V, LAT, LON, dim, k):
        kx, kp = jax.random.split(k)
        x = jax.random.normal(kx, (B, V, LAT, LON, dim), dtype=jnp.float32)
        params = init_params(dim, kp)
        out = jax.block_until_ready(downsample_forward(x, V, LAT, LON, params))
        lat_p, lon_p = _round_up(LAT, 2), _round_up(LON, 2)
        assert out.shape == (B, V * (lat_p // 2) * (lon_p // 2), 2 * dim), out.shape
        ref = _reference(x, V, LAT, LON, params)
        max_err = float(jnp.max(jnp.abs(out - ref)))
        # bf16 matmul (f32 accumulation, f32 LN stats) vs f32 reference -> loose tolerance.
        assert jnp.allclose(out, ref, atol=2e-2, rtol=2e-2), max_err

    k1, k2, k3 = jax.random.split(key, 3)
    # Fused-merge fast path: Lon//2 = 8 (multiple of 8), 4C=256 / 2C=128 lane-dense.
    run_case(B=2, V=2, LAT=8, LON=16, dim=64, k=k1)
    # Even lat/lon but Lon//2 = 3 not a multiple of 8 -> fallback (XLA merge) path, ragged N.
    run_case(B=1, V=2, LAT=6, LON=6, dim=64, k=k2)
    # Odd lat/lon -> zero-padding path (pads to 6x8), fallback kernel.
    run_case(B=1, V=1, LAT=5, LON=7, dim=32, k=k3)

    print("KERNEL_OK")
</pallas_src>

<mosaic_0001>
module attributes {stable_mosaic.version = 11 : i64} {
  func.func @_fused_kernel(%arg0: i32, %arg1: memref<8x1x8x128xf32, #tpu.memory_space<vmem>>, %arg2: memref<8x1x8x128xf32, #tpu.memory_space<vmem>>, %arg3: memref<128x128xbf16, #tpu.memory_space<vmem>>, %arg4: memref<128x128xbf16, #tpu.memory_space<vmem>>, %arg5: memref<1x128xf32, #tpu.memory_space<vmem>>, %arg6: memref<64x128xf32, #tpu.memory_space<vmem>>) attributes {dimension_semantics = [#tpu.dimension_semantics<parallel>], iteration_bounds = array<i64: 2>, scalar_prefetch = 0 : i64, scratch_operands = 0 : i64, tpu.core_type = #tpu.core_type<tc>, window_params = [{transform_indices = @transform_0, window_bounds = array<i64: 8, 1, 8, 128>}, {transform_indices = @transform_1, window_bounds = array<i64: 8, 1, 8, 128>}, {pipeline_mode = #tpu.pipeline_mode<synchronous>, transform_indices = @transform_2, window_bounds = array<i64: 128, 128>}, {pipeline_mode = #tpu.pipeline_mode<synchronous>, transform_indices = @transform_3, window_bounds = array<i64: 128, 128>}, {pipeline_mode = #tpu.pipeline_mode<synchronous>, transform_indices = @transform_4, window_bounds = array<i64: 1, 128>}, {transform_indices = @transform_5, window_bounds = array<i64: 64, 128>}]} {
    %c0 = arith.constant 0 : index
    %c0_0 = arith.constant 0 : index
    %c0_1 = arith.constant 0 : index
    %c0_2 = arith.constant 0 : index
    %0 = vector.load %arg1[%c0, %c0_0, %c0_1, %c0_2] : memref<8x1x8x128xf32, #tpu.memory_space<vmem>>, vector<8x1x8x128xf32>
    %1 = vector.shape_cast %0 : vector<8x1x8x128xf32> to vector<8x8x128xf32>
    %c0_3 = arith.constant 0 : index
    %c0_4 = arith.constant 0 : index
    %c0_5 = arith.constant 0 : index
    %c0_6 = arith.constant 0 : index
    %2 = vector.load %arg2[%c0_3, %c0_4, %c0_5, %c0_6] : memref<8x1x8x128xf32, #tpu.memory_space<vmem>>, vector<8x1x8x128xf32>
    %3 = vector.shape_cast %2 : vector<8x1x8x128xf32> to vector<8x8x128xf32>
    %cst = arith.constant dense<0.000000e+00> : vector<8x8xf32>
    %4 = vector.multi_reduction <add>, %1, %cst [2] : vector<8x8x128xf32> to vector<8x8xf32>
    %5 = vector.shape_cast %4 : vector<8x8xf32> to vector<8x8x1xf32>
    %cst_7 = arith.constant dense<0.000000e+00> : vector<8x8xf32>
    %6 = vector.multi_reduction <add>, %3, %cst_7 [2] : vector<8x8x128xf32> to vector<8x8xf32>
    %7 = vector.shape_cast %6 : vector<8x8xf32> to vector<8x8x1xf32>
    %8 = arith.addf %5, %7 : vector<8x8x1xf32>
    %9 = arith.mulf %1, %1 : vector<8x8x128xf32>
    %cst_8 = arith.constant dense<0.000000e+00> : vector<8x8xf32>
    %10 = vector.multi_reduction <add>, %9, %cst_8 [2] : vector<8x8x128xf32> to vector<8x8xf32>
    %11 = vector.shape_cast %10 : vector<8x8xf32> to vector<8x8x1xf32>
    %12 = arith.mulf %3, %3 : vector<8x8x128xf32>
    %cst_9 = arith.constant dense<0.000000e+00> : vector<8x8xf32>
    %13 = vector.multi_reduction <add>, %12, %cst_9 [2] : vector<8x8x128xf32> to vector<8x8xf32>
    %14 = vector.shape_cast %13 : vector<8x8xf32> to vector<8x8x1xf32>
    %15 = arith.addf %11, %14 : vector<8x8x1xf32>
    %cst_10 = arith.constant 3.906250e-03 : f32
    %16 = vector.broadcast %cst_10 : f32 to vector<8x8x1xf32>
    %17 = arith.mulf %8, %16 : vector<8x8x1xf32>
    %cst_11 = arith.constant 3.906250e-03 : f32
    %18 = vector.broadcast %cst_11 : f32 to vector<8x8x1xf32>
    %19 = arith.mulf %15, %18 : vector<8x8x1xf32>
    %20 = arith.mulf %17, %17 : vector<8x8x1xf32>
    %21 = arith.subf %19, %20 : vector<8x8x1xf32>
    %cst_12 = arith.constant 9.99999974E-6 : f32
    %22 = vector.broadcast %cst_12 : f32 to vector<8x8x1xf32>
    %23 = arith.addf %21, %22 : vector<8x8x1xf32>
    %24 = math.rsqrt %23 : vector<8x8x1xf32>
    %25 = vector.broadcast %17 : vector<8x8x1xf32> to vector<8x8x128xf32>
    %26 = arith.subf %1, %25 : vector<8x8x128xf32>
    %27 = vector.broadcast %24 : vector<8x8x1xf32> to vector<8x8x128xf32>
    %28 = arith.mulf %26, %27 : vector<8x8x128xf32>
    %29 = vector.broadcast %17 : vector<8x8x1xf32> to vector<8x8x128xf32>
    %30 = arith.subf %3, %29 : vector<8x8x128xf32>
    %31 = vector.broadcast %24 : vector<8x8x1xf32> to vector<8x8x128xf32>
    %32 = arith.mulf %30, %31 : vector<8x8x128xf32>
    %33 = vector.shape_cast %28 : vector<8x8x128xf32> to vector<64x128xf32>
    %34 = arith.truncf %33 : vector<64x128xf32> to vector<64x128xbf16>
    %35 = vector.shape_cast %32 : vector<8x8x128xf32> to vector<64x128xf32>
    %36 = arith.truncf %35 : vector<64x128xf32> to vector<64x128xbf16>
    %c0_13 = arith.constant 0 : index
    %c0_14 = arith.constant 0 : index
    %37 = vector.load %arg3[%c0_13, %c0_14] : memref<128x128xbf16, #tpu.memory_space<vmem>>, vector<128x128xbf16>
    %cst_15 = arith.constant dense<0.000000e+00> : vector<64x128xf32>
    %38 = tpu.matmul %34, %37, %cst_15 {dimension_numbers = #tpu.dot_dimension_numbers<[1], [0], [0], [1], [0, 0, 1, 1], [], []>} : vector<64x128xbf16>, vector<128x128xbf16>, vector<64x128xf32> -> vector<64x128xf32>
    %c0_16 = arith.constant 0 : index
    %c0_17 = arith.constant 0 : index
    %39 = vector.load %arg4[%c0_16, %c0_17] : memref<128x128xbf16, #tpu.memory_space<vmem>>, vector<128x128xbf16>
    %cst_18 = arith.constant dense<0.000000e+00> : vector<64x128xf32>
    %40 = tpu.matmul %36, %39, %cst_18 {dimension_numbers = #tpu.dot_dimension_numbers<[1], [0], [0], [1], [0, 0, 1, 1], [], []>} : vector<64x128xbf16>, vector<128x128xbf16>, vector<64x128xf32> -> vector<64x128xf32>
    %41 = arith.addf %38, %40 : vector<64x128xf32>
    %c0_19 = arith.constant 0 : index
    %c0_20 = arith.constant 0 : index
    %42 = vector.load %arg5[%c0_19, %c0_20] : memref<1x128xf32, #tpu.memory_space<vmem>>, vector<1x128xf32>
    %43 = vector.broadcast %42 : vector<1x128xf32> to vector<64x128xf32>
    %44 = arith.addf %41, %43 : vector<64x128xf32>
    %c0_21 = arith.constant 0 : index
    %c0_22 = arith.constant 0 : index
    %45 = vector.load %arg6[%c0_21, %c0_22] : memref<64x128xf32, #tpu.memory_space<vmem>>, vector<64x128xf32>
    tpu.vector_store %arg6[%c0_21, %c0_22], %44 {strides = array<i32>} : memref<64x128xf32, #tpu.memory_space<vmem>>, vector<64x128xf32>,
    return
  }
  func.func @transform_0(%arg0: i32) -> (i32, i32, i32, i32) {
    %c0_i32 = arith.constant 0 : i32
    %c0_i32_0 = arith.constant 0 : i32
    %c0_i32_1 = arith.constant 0 : i32
    %c0_i32_2 = arith.constant 0 : i32
    return %arg0, %c0_i32, %c0_i32_0, %c0_i32_1 : i32, i32, i32, i32
  }
  func.func @transform_1(%arg0: i32) -> (i32, i32, i32, i32) {
    %c1_i32 = arith.constant 1 : i32
    %c0_i32 = arith.constant 0 : i32
    %c0_i32_0 = arith.constant 0 : i32
    %c0_i32_1 = arith.constant 0 : i32
    return %arg0, %c1_i32, %c0_i32, %c0_i32_0 : i32, i32, i32, i32
  }
  func.func @transform_2(%arg0: i32) -> (i32, i32) {
    %c0_i32 = arith.constant 0 : i32
    %c0_i32_0 = arith.constant 0 : i32
    %c0_i32_1 = arith.constant 0 : i32
    return %c0_i32, %c0_i32_0 : i32, i32
  }
  func.func @transform_3(%arg0: i32) -> (i32, i32) {
    %c0_i32 = arith.constant 0 : i32
    %c0_i32_0 = arith.constant 0 : i32
    %c0_i32_1 = arith.constant 0 : i32
    return %c0_i32, %c0_i32_0 : i32, i32
  }
  func.func @transform_4(%arg0: i32) -> (i32, i32) {
    %c0_i32 = arith.constant 0 : i32
    %c0_i32_0 = arith.constant 0 : i32
    %c0_i32_1 = arith.constant 0 : i32
    return %c0_i32, %c0_i32_0 : i32, i32
  }
  func.func @transform_5(%arg0: i32) -> (i32, i32) {
    %c0_i32 = arith.constant 0 : i32
    %c0_i32_0 = arith.constant 0 : i32
    return %arg0, %c0_i32 : i32, i32
  }
}

</mosaic_0001>

<bundles_post_ra>
// kernel: tpu_custom_call.1
= control target key start
LH: loop header
LB: loop body
LE: loop exit
PB: predicated region body
PF: predicated region fallthrough
CT: control target
= control target key end

     0   :  { %s1756_s0 = inlined_call_operand.hbm [shape: f32[16,2,8,128], index: 0, kind: input, shape index: {}]   ;;  %s1757_s1 = inlined_call_operand.hbm [shape: f32[16,2,8,128], index: 1, kind: input, shape index: {}]   ;;  %s1758_s2 = inlined_call_operand.hbm [shape: bf16[128,128], index: 2, kind: input, shape index: {}]   ;;  %s1759_s3 = inlined_call_operand.hbm [shape: bf16[128,128], index: 3, kind: input, shape index: {}]   ;;  %s1760_s4 = inlined_call_operand.vmem [shape: f32[1,128], index: 4, kind: input, shape index: {}]   ;;  %s1761_s5 = inlined_call_operand.hbm [shape: f32[128,128], index: 5, kind: output, shape index: {}]  }
   0x1   :  { %1766 = sst [smem:[#allocation19_spill]] %s1756_s0 }
   0x2   :  { %1767 = sst [smem:[#allocation20_spill]] %s1758_s2 }
   0x3   :  { %1768 = sst [smem:[#allocation21_spill]] %s1759_s3 }
   0x4   :  { %10 = vsyncpa [#allocation3], 0 }
   0x5   :  { %12 = vsyncpa [#allocation3 + $0x1], 0 }
   0x6   :  { %13 = vsyncpa [#allocation6], 0 }
   0x7   :  { %15 = vsyncpa [#allocation6 + $0x1], 0 }
   0x8   :  { %16 = vsyncpa [#allocation9], 0 }
   0x9   :  { %17 = vsyncpa [#allocation4], 0 }
   0xa   :  { %19 = vsyncpa [#allocation4 + $0x1], 0  ;;  %s1395_s18 = smov 0   ;;  %s1397_s19 = smov 0  }
   0xb   :  { %s1399_s20 = smov 0   ;;  %s1401_s21 = smov 0  }
   0xc LB: > { %1769 = sst [smem:[#allocation16_spill]] %s1350_s20  ;;  %s1416_s22 = sadd.s32 4294967295, %s1354_s21   ;;  %s1354_s21 = sphi %s1401_s21, %s1782_s21   ;;  %s1350_s20 = sphi %s1399_s20, %s1784_s20   ;;  %s1346_s19 = sphi %s1397_s19, %s1786_s19   ;;  %s1342_s18 = sphi %s1395_s18, %s1785_s18  }
   0xd   : > { %s937_s23 = sadd.s32 4294967294, %s1354_s21   ;;  %p45_p0 = scmp.ne.s32.totalorder %s1346_s19, %s1342_s18 }
   0xe   : > { %p46_p1 = scmp.eq.s32.totalorder %s1416_s22, 0  ;;  %p158_p2 = scmp.eq.s32.totalorder %s1416_s22, 1 }
   0xf   : > { %p164_p3 = scmp.eq.s32.totalorder %s937_s23, 1  ;;  %p938_p5 = scmp.ge.s32.totalorder %s1354_s21, 1 }
  0x10   : > { %p1425_p4 = por %p46_p1, %p45_p0  ;;  %p171_p7 = scmp.lt.s32.totalorder %s1354_s21, 3 }
  0x11   : > { %p1430_p6 = por %p164_p3, %p45_p0  ;;  %s1772_s2 = sld [smem:[#allocation20_spill]] }
  0x12   : > { %p1438_p8 = pnand %p938_p5, %p171_p7  ;;  %s1356_s30 = smov [#allocation7]  }
  0x13   : > { %s184_s6 = sshll.u32 %s1356_s30, 4  ;;  %s1774_s3 = sld [smem:[#allocation21_spill]]  ;;  %s185_s6 = int_to_ptr.vmem [resolvable:$true] %s184_s6 }
  0x14   : > { %p1074_p9 = pneg %p1438_p8  ;;  %s1357_s10 = smov 64  }
  0x15   : > { %s1358_s11 = smov 4   ;;  %s1359_s12 = smov [#allocation8]  }
  0x16   : > { %p1075_p10 = pnand %p1074_p9, %p46_p1  ;;  %s198_s13 = sshll.u32 %s1359_s12, 4  ;;  %s199_s13 = int_to_ptr.vmem [resolvable:$true] %s198_s13 }
  0x17   : > { %s182_s28 = sshll.u32 %s1772_s2, 4  ;;  %s1451_s14 = sadd.s32 1, %s1354_s21   ;;  %s183_s28 = int_to_ptr.hbm [resolvable:$true] %s182_s28 }
  0x18   : > { %1077 = dma.hbm_to_vmem [thread:$0]  (!%p1075_p10), %s183_s28, 1024, %s185_s6, [#allocation6], %s1357_s10, %s1357_s10, %s1358_s11  }
  0x19   : > { %s196_s9 = sshll.u32 %s1774_s3, 4  ;;  %1775 = sst [smem:[#allocation17_spill]] %s1451_s14  ;;  %s197_s9 = int_to_ptr.hbm [resolvable:$true] %s196_s9 }
  0x1a   : > { %1080 = dma.hbm_to_vmem [thread:$0]  (!%p1075_p10), %s197_s9, 1024, %s199_s13, [#allocation9], %s1357_s10, %s1357_s10, %s1358_s11  }
  0x1b   : > { %s32_s15 = sadd.s32 1, %s1350_s20  ;;  %s29_s16 = ssub.s32 %s1354_s21, %s1451_s14 }
  0x1c   : > { %p39_p12 = scmp.ne.s32.totalorder %s1350_s20, %s1346_s19  ;;  %p30_p13 = scmp.eq.s32.totalorder %s29_s16, 0 }
  0x1d   : > { %p40_p0 = scmp.eq.s32.totalorder %s1354_s21, 0  ;;  %p1094_p5 = scmp.lt.s32.totalorder %s1354_s21, 2 }
  0x1e   : > { %p1461_p3 = por %p158_p2, %p39_p12  ;;  %s215_s26 = sand.u32 1, %s1350_s20  }
  0x1f   : > { %s1467_s23 = scalar_select %p30_p13, %s1350_s20, %s32_s15  }
  0x20   : > { %p41_p7 = por %p40_p0, %p39_p12  ;;  %s1470_s27 = sshll.u32 %s215_s26, 6 }
  0x21   : > { %1777 = sst [smem:[#allocation18_spill]] %s1467_s23  ;;  %s1762_s28 = sshll.u32 %s1354_s21, 7 }
  0x22   : > { %s1778_s0 = sld [smem:[#allocation19_spill]]  ;;  %s219_s8 = scalar_lea.vmem [#allocation2], %s1470_s27 }
  0x23   : > { %s228_s9 = sshll.u32 %s219_s8, 4  ;;  %p1479_p2 = pnand %p1094_p5, %p41_p7  ;;  %s229_s9 = int_to_ptr.vmem [resolvable:$true] %s228_s9 }
  0x24   : > { %s216_s12 = scalar_lea.sflag [#allocation3], %s215_s26 }
  0x25   : > { %p1220_p10 = pneg %p1479_p2 }
  0x28   : > { %s225_s7 = scalar_lea.hbm %s1778_s0, %s1762_s28  ;;  %s1223_s6 = scalar_lea.hbm %s1778_s0, 256 }
  0x29   : > { %s226_s10 = sshll.u32 %s225_s7, 4  ;;  %s227_s10 = int_to_ptr.hbm [resolvable:$true] %s226_s10 }
  0x2a   : > { %s1216_s13 = sshra.s32 %s227_s10, 4  ;;  %s1217_s13 = int_to_ptr.hbm [resolvable:$true] %s1216_s13 }
  0x2b   : > { %s1218_s15 = scalar_lea.hbm %s1217_s13, 64  ;;  %p1224_p0 = scmp.lt.s32.totalorder %s1217_s13, %s1778_s0 }
  0x2c   : > { %p1219_p9 = scmp.ne.s32.totalorder %s1217_s13, %s1218_s15  ;;  %p1225_p5 = scmp.lt.s32.totalorder %s1223_s6, %s1218_s15 }
  0x2e   : > { %p1221_p12 = pnand %p1220_p10, %p1219_p9  ;;  %p1226_p7 = por %p1225_p5, %p1224_p0 }
  0x30   : > { %p1222_p13 = pneg %p1221_p12 }
  0x32   : > { %p1227_p11 = pnand %p1226_p7, %p1222_p13 }
  0x34   : > { %1230 = shalt.err (!%p1227_p11)
}
  0x35   : > { %s1360_s26 = smov 256   ;;  %s1361_s28 = smov 128  }
  0x36   : > { %s1362_s2 = smov 8   ;;  %s1780_s16 = sshll.u32 %s1354_s21, 7 }
  0x37   : > { %1084 = dma.hbm_to_vmem [thread:$0]  (!%p1479_p2), %s227_s10, 1024, %s229_s9, %s216_s12, %s1360_s26, %s1361_s28, %s1362_s2  }
  0x38   : > { %s861_s13 = scalar_lea.hbm %s1757_s1, %s1780_s16  ;;  %s242_s6 = scalar_lea.vmem [#allocation5], %s1470_s27 }
  0x39   : > { %s862_s15 = scalar_lea.hbm %s861_s13, 8  ;;  %s252_s7 = sshll.u32 %s242_s6, 4  ;;  %s253_s7 = int_to_ptr.vmem [resolvable:$true] %s252_s7 }
  0x3a   : > { %s250_s8 = sshll.u32 %s862_s15, 4  ;;  %s238_s0 = sand.u32 1, %s1354_s21   ;;  %s251_s8 = int_to_ptr.hbm [resolvable:$true] %s250_s8 }
  0x3b   : > { %s239_s23 = scalar_lea.sflag [#allocation6], %s238_s0  ;;  %s1246_s20 = sshra.s32 %s251_s8, 4  ;;  %s1247_s20 = int_to_ptr.hbm [resolvable:$true] %s1246_s20 }
  0x3c   : > { %s1248_s14 = scalar_lea.hbm %s1247_s20, 64  ;;  %s1253_s3 = scalar_lea.hbm %s1757_s1, 256 }
  0x3d   : > { %p1249_p11 = scmp.ne.s32.totalorder %s1247_s20, %s1248_s14  ;;  %p1254_p13 = scmp.lt.s32.totalorder %s1247_s20, %s1757_s1 }
  0x3e   : > { %p1255_p0 = scmp.lt.s32.totalorder %s1253_s3, %s1248_s14 }
  0x3f   : > { %p1251_p9 = pnand %p1249_p11, %p1220_p10 }
  0x40   : > { %p1256_p5 = por %p1255_p0, %p1254_p13 }
  0x41   : > { %p1252_p12 = pneg %p1251_p9 }
  0x43   : > { %p1257_p7 = pnand %p1256_p5, %p1252_p12 }
  0x45   : > { %1260 = shalt.err (!%p1257_p7)
}
  0x46   : > { %1087 = dma.hbm_to_vmem [thread:$0]  (!%p1479_p2), %s251_s8, 1024, %s253_s7, %s239_s23, %s1360_s26, %s1361_s28, %s1362_s2  }
  0x47   : > { %264 = sbr.rel (%p1438_p8) target bundleno = 454 (0x1c6), region = 40  ;;  %s1519_s0 = sand.u32 (!%p1438_p8), 1, %s1346_s19  }
  0x48   : > { %s1522_s16 = sshll.u32 (!%p1438_p8), %s1519_s0, 6  ;;  %s267_s20 = scalar_lea.sflag (!%p1438_p8), [#allocation3], %s1519_s0 }
  0x49   : > { %s1526_s14 = scalar_lea.vmem (!%p1438_p8), [#allocation2], %s1522_s16 }
  0x4c   : > { %1321 = dma.done.wait (%p1425_p4), %s267_s20, 1024  }
  0x4d   : > { %1323 = vsyncadd (%p1425_p4), %s267_s20, 4294966272  ;;  %s276_s2 = sand.u32 1, %s1416_s22   ;;  %s1534_s23 = scalar_lea.vmem [#allocation5], %s1522_s16 }
  0x4e   : > { %s277_s29 = scalar_lea.sflag [#allocation6], %s276_s2 }
  0x4f   : > { %1325 = dma.done.wait (%p1425_p4), %s277_s29, 1024  }
  0x50   : > { %1327 = vsyncadd (%p1425_p4), %s277_s29, 4294966272 }
  0x51   : > { %1329 = dma.done.wait (%p46_p1), [#allocation6], 1024  }
  0x52   : > { %1331 = vsyncadd (%p46_p1), [#allocation6], 4294966272 }
  0x53   : > { %1333 = dma.done.wait (%p46_p1), [#allocation9], 1024  }
  0x54   : > { %1335 = vsyncadd (%p46_p1), [#allocation9], 4294966272  ;;  %v1549_v0 = vld [vmem:[%s1534_s23 + $0x20] sm:$0xff]  ;;  %v1559_v3 = vld [vmem:[%s1526_s14 + $0x28] sm:$0xff]  ;;  %s1712_s11 = scalar_lea.vmem [#allocation10], %s1522_s16  ;;  %s1043_s26 = sshll.u32 %s1416_s22, 6 }
  0x55   : > { %v1552_v1 = vld [vmem:[%s1526_s14 + $0x20] sm:$0xff]  ;;  %366 = vadd.xlane.f32.xlu1 %v1549_v0  ;;  %v1562_v4 = vld [vmem:[%s1534_s23 + $0x28] sm:$0xff]  ;;  %v387_v5 = vmul.f32 %v1559_v3, %v1559_v3  ;;  %v410_v7 = vmul.f32 %v1549_v0, %v1549_v0  ;;  %v1597_v16 = vld [vmem:[%s1526_s14 + $0x30] sm:$0xff]  ;;  %s816_s15 = scalar_lea.hbm %s1761_s5, %s1043_s26  ;;  %s817_s6 = sshll.u32 %s1712_s11, 4  ;;  %s818_s6 = int_to_ptr.vmem [resolvable:$true] %s817_s6 }
  0x56   : > { %350 = vadd.xlane.f32.xlu0 %v1552_v1  ;;  %v386_v2 = vmul.f32 %v1552_v1, %v1552_v1  ;;  %v411_v6 = vmul.f32 %v1562_v4, %v1562_v4  ;;  %v1573_v8 = vld [vmem:[%s1526_s14] sm:$0xff]  ;;  %v1580_v10 = vld [vmem:[%s1526_s14 + $0x8] sm:$0xff]  ;;  %v1600_v17 = vld [vmem:[%s1526_s14 + $0x38] sm:$0xff]  ;;  %v388_v20 = vmul.f32 %v1597_v16, %v1597_v16  ;;  %s819_s7 = sshll.u32 %s816_s15, 4  ;;  %s805_s8 = scalar_lea.sflag [#allocation4], %s1519_s0  ;;  %s820_s7 = int_to_ptr.hbm [resolvable:$true] %s819_s7 }
  0x57   : > { %v1577_v9 = vld [vmem:[%s1534_s23] sm:$0xff]  ;;  %v1583_v11 = vld [vmem:[%s1534_s23 + $0x8] sm:$0xff]  ;;  %v383_v12 = vmul.f32 %v1580_v10, %v1580_v10  ;;  %v382_v13 = vmul.f32 %v1573_v8, %v1573_v8  ;;  %v1605_v18 = vld [vmem:[%s1534_s23 + $0x38] sm:$0xff]  ;;  %v389_v22 = vmul.f32 %v1600_v17, %v1600_v17  ;;  %s1290_s9 = sshra.s32 %s820_s7, 4  ;;  %s1296_s12 = scalar_lea.hbm %s1761_s5, 128  ;;  %s1291_s9 = int_to_ptr.hbm [resolvable:$true] %s1290_s9 }
  0x58   : > { %398 = vadd.xlane.f32.xlu2 %v386_v2  ;;  %v406_v14 = vmul.f32 %v1577_v9, %v1577_v9  ;;  %v407_v15 = vmul.f32 %v1583_v11, %v1583_v11  ;;  %v1608_v19 = vld [vmem:[%s1534_s23 + $0x30] sm:$0xff]  ;;  %v413_v23 = vmul.f32 %v1605_v18, %v1605_v18  ;;  %v1621_v24 = vld [vmem:[%s1526_s14 + $0x18] sm:$0xff]  ;;  %v1040_v36 = vld [vmem:[#allocation8 + $0x28] sm:$0xff]  ;;  %s1292_s22 = scalar_lea.hbm %s1291_s9, 64  ;;  %p1297_p2 = scmp.lt.s32.totalorder %s1291_s9, %s1761_s5 }
  0x59   : > { %v412_v21 = vmul.f32 %v1608_v19, %v1608_v19  ;;  %v1624_v25 = vld [vmem:[%s1526_s14 + $0x10] sm:$0xff]  ;;  %v1635_v28 = vld [vmem:[%s1534_s23 + $0x18] sm:$0xff]  ;;  %v385_v29 = vmul.f32 %v1621_v24, %v1621_v24  ;;  %v1032_v37 = vld [vmem:[#allocation7 + $0x28] sm:$0xff]  ;;  %p1293_p1 = scmp.ne.s32.totalorder %s1291_s9, %s1292_s22  ;;  %p1298_p10 = scmp.lt.s32.totalorder %s1296_s12, %s1292_s22 }
  0x5a   : > { %v1627_v26 = vld [vmem:[%s1534_s23 + $0x10] sm:$0xff]  ;;  %v384_v27 = vmul.f32 %v1624_v25, %v1624_v25  ;;  %v409_v30 = vmul.f32 %v1635_v28, %v1635_v28  ;;  %v1042_v32 = vld [vmem:[#allocation8 + $0x38] sm:$0xff]  ;;  %v1039_v38 = vld [vmem:[#allocation8 + $0x20] sm:$0xff] }
  0x5b   : > { %v408_v31 = vmul.f32 %v1627_v26, %v1627_v26  ;;  %v1034_v33 = vld [vmem:[#allocation7 + $0x38] sm:$0xff]  ;;  %1044 = vmatpush.bf16.msra.mxu2 %v1042_v32  ;;  %678 = vmatpush.bf16.msra.mxu0 %v1042_v32  ;;  %v1041_v34 = vld [vmem:[#allocation8 + $0x30] sm:$0xff]  ;;  %v1031_v39 = vld [vmem:[#allocation7 + $0x20] sm:$0xff]  ;;  %p1294_p4 = pnand %p1293_p1, %p1461_p3  ;;  %p1299_p11 = por %p1298_p10, %p1297_p2 }
  0x5c   : > { %1052 = vmatpush.bf16.msra.mxu3 %v1034_v33  ;;  %755 = vmatpush.bf16.msra.mxu1 %v1034_v33  ;;  %v1033_v35 = vld [vmem:[#allocation7 + $0x30] sm:$0xff]  ;;  %v1038_v40 = vld [vmem:[#allocation8 + $0x18] sm:$0xff]  ;;  %v1036_v47 = vld [vmem:[#allocation8 + $0x8] sm:$0xff] }
  0x5d   : > { %368 = vadd.xlane.f32.xlu1 %v1562_v4  ;;  %v1030_v41 = vld [vmem:[#allocation7 + $0x18] sm:$0xff]  ;;  %v1037_v45 = vld [vmem:[#allocation8 + $0x10] sm:$0xff]  ;;  %v1028_v48 = vld [vmem:[#allocation7 + $0x8] sm:$0xff]  ;;  %p1295_p8 = pneg %p1294_p4 }
  0x5e   : > { %352 = vadd.xlane.f32.xlu0 %v1559_v3  ;;  %v1029_v46 = vld [vmem:[#allocation7 + $0x10] sm:$0xff]  ;;  %v1035_v54 = vld [vmem:[#allocation8] sm:$0xff] }
  0x5f   : > { %1045 = vmatpush.bf16.msra.mxu2 %v1041_v34  ;;  %679 = vmatpush.bf16.msra.mxu0 %v1041_v34  ;;  %v1027_v55 = vld [vmem:[#allocation7] sm:$0xff]  ;;  %p1300_p9 = pnand %p1299_p11, %p1295_p8 }
  0x60   : > { %400 = vadd.xlane.f32.xlu2 %v387_v5  ;;  %1053 = vmatpush.bf16.msra.mxu3 %v1033_v35 }
  0x61   : > { %756 = vmatpush.bf16.msra.mxu1 %v1033_v35 }
  0x63   : > { %1046 = vmatpush.bf16.msra.mxu2 %v1040_v36  ;;  %680 = vmatpush.bf16.msra.mxu0 %v1040_v36 }
  0x64   : > { %1054 = vmatpush.bf16.msra.mxu3 %v1032_v37 }
  0x65   : > { %424 = vadd.xlane.f32.xlu1 %v411_v6  ;;  %757 = vmatpush.bf16.msra.mxu1 %v1032_v37 }
  0x66   : > { %422 = vadd.xlane.f32.xlu0 %v410_v7 }
  0x67   : > { %1047 = vmatpush.bf16.msra.mxu2 %v1039_v38  ;;  %681 = vmatpush.bf16.msra.mxu0 %v1039_v38 }
  0x68   : > { %342 = vadd.xlane.f32.xlu2 %v1573_v8  ;;  %1055 = vmatpush.bf16.msra.mxu3 %v1031_v39 }
  0x69   : > { %758 = vmatpush.bf16.msra.mxu1 %v1031_v39 }
  0x6b   : > { %1048 = vmatpush.bf16.msra.mxu2 %v1038_v40  ;;  %682 = vmatpush.bf16.msra.mxu0 %v1038_v40 }
  0x6c   : > { %1056 = vmatpush.bf16.msra.mxu3 %v1030_v41 }
  0x6d   : > { %358 = vadd.xlane.f32.xlu1 %v1577_v9  ;;  %759 = vmatpush.bf16.msra.mxu1 %v1030_v41 }
  0x6e   : > { %344 = vadd.xlane.f32.xlu0 %v1580_v10 }
  0x6f   : > { %1049 = vmatpush.bf16.msra.mxu2 %v1037_v45  ;;  %683 = vmatpush.bf16.msra.mxu0 %v1037_v45 }
  0x70   : > { %360 = vadd.xlane.f32.xlu2 %v1583_v11  ;;  %1057 = vmatpush.bf16.msra.mxu3 %v1029_v46 }
  0x71   : > { %760 = vmatpush.bf16.msra.mxu1 %v1029_v46 }
  0x73   : > { %1050 = vmatpush.bf16.msra.mxu2 %v1036_v47  ;;  %684 = vmatpush.bf16.msra.mxu0 %v1036_v47 }
  0x74   : > { %1058 = vmatpush.bf16.msra.mxu3 %v1028_v48 }
  0x75   : > { %392 = vadd.xlane.f32.xlu1 %v383_v12  ;;  %761 = vmatpush.bf16.msra.mxu1 %v1028_v48 }
  0x76   : > { %390 = vadd.xlane.f32.xlu0 %v382_v13 }
  0x77   : > { %1051 = vmatpush.bf16.msra.mxu2 %v1035_v54  ;;  %685 = vmatpush.bf16.msra.mxu0 %v1035_v54 }
  0x78   : > { %414 = vadd.xlane.f32.xlu2 %v406_v14  ;;  %1059 = vmatpush.bf16.msra.mxu3 %v1027_v55 }
  0x79   : > { %762 = vmatpush.bf16.msra.mxu1 %v1027_v55 }
  0x7d   : > { %354 = vadd.xlane.f32.xlu1 %v1597_v16 }
  0x7e   : > { %416 = vadd.xlane.f32.xlu0 %v407_v15 }
  0x80   : > { %356 = vadd.xlane.f32.xlu2 %v1600_v17 }
  0x85   : > { %372 = vadd.xlane.f32.xlu1 %v1605_v18 }
  0x86   : > { %370 = vadd.xlane.f32.xlu0 %v1608_v19 }
  0x88   : > { %402 = vadd.xlane.f32.xlu2 %v388_v20 }
  0x8d   : > { %426 = vadd.xlane.f32.xlu1 %v412_v21 }
  0x8e   : > { %404 = vadd.xlane.f32.xlu0 %v389_v22 }
  0x90   : > { %428 = vadd.xlane.f32.xlu2 %v413_v23 }
  0x95   : > { %348 = vadd.xlane.f32.xlu1 %v1621_v24 }
  0x96   : > { %346 = vadd.xlane.f32.xlu0 %v1624_v25 }
  0x98   : > { %362 = vadd.xlane.f32.xlu2 %v1627_v26 }
  0x9d   : > { %394 = vadd.xlane.f32.xlu1 %v384_v27 }
  0x9e   : > { %364 = vadd.xlane.f32.xlu0 %v1635_v28 }
  0xa0   : > { %396 = vadd.xlane.f32.xlu2 %v385_v29 }
  0xa5   : > { %420 = vadd.xlane.f32.xlu1 %v409_v30 }
  0xa6   : > { %418 = vadd.xlane.f32.xlu0 %v408_v31 }
  0xc8   : > { %v367_v42 = vpop.xlane.xlu1 %366 }
  0xc9   : > { %v351_v43 = vpop.xlane.xlu0 %350 }
  0xca   : > { %v378_v52 = vadd.f32 %v367_v42, %v351_v43 }
  0xcb   : > { %v399_v44 = vpop.xlane.xlu2 %398 }
  0xcc   : > { %v1644_v56 = vmul.f32 0.00390625, %v378_v52 }
  0xce   : > { %v458_v5 = vmul.f32 %v1644_v56, %v1644_v56 }
  0xd0   : > { %v369_v49 = vpop.xlane.xlu1 %368 }
  0xd1   : > { %v353_v50 = vpop.xlane.xlu0 %352 }
  0xd2   : > { %v379_v53 = vadd.f32 %v369_v49, %v353_v50  ;;  %v578_v50 = vsub.f32 %v1549_v0, %v1644_v56 }
  0xd3   : > { %v401_v51 = vpop.xlane.xlu2 %400 }
  0xd4   : > { %v1646_v57 = vmul.f32 0.00390625, %v379_v53 }
  0xd6   : > { %v459_v2 = vmul.f32 %v1646_v57, %v1646_v57  ;;  %v563_v0 = vsub.f32 %v1559_v3, %v1646_v57 }
  0xd8   : > { %v425_v58 = vpop.xlane.xlu1 %424 }
  0xd9   : > { %v423_v59 = vpop.xlane.xlu0 %422  ;;  %v435_v60 = vadd.f32 %v425_v58, %v401_v51  ;;  %v579_v51 = vsub.f32 %v1562_v4, %v1646_v57 }
  0xda   : > { %v434_v61 = vadd.f32 %v423_v59, %v399_v44 }
  0xdb   : > { %v343_v62 = vpop.xlane.xlu2 %342  ;;  %v451_v63 = vmul.f32 0.00390625, %v435_v60  ;;  %v562_v60 = vsub.f32 %v1552_v1, %v1644_v56 }
  0xdc   : > { %v450_v6 = vmul.f32 0.00390625, %v434_v61 }
  0xdd   : > { %v467_v7 = vsub.f32 %v451_v63, %v459_v2 }
  0xde   : > { %v466_v12 = vsub.f32 %v450_v6, %v458_v5 }
  0xdf   : > { %v475_v13 = vadd.f32 1e-05, %v467_v7 }
  0xe0   : > { %v474_v14 = vadd.f32 1e-05, %v466_v12  ;;  %v359_v15 = vpop.xlane.xlu1 %358 }
  0xe1   : > { %v345_v20 = vpop.xlane.xlu0 %344  ;;  %1140 = vrsqrt.f32 %v475_v13  ;;  %v374_v22 = vadd.f32 %v359_v15, %v343_v62  ;;  %vm534_vm2 = vweird.f32 %v475_v13 }
  0xe2   : > { %1142 = vrsqrt.f32 %v474_v14  ;;  %vm524_vm3 = vweird.f32 %v474_v14 }
  0xe3   : > { %v361_v21 = vpop.xlane.xlu2 %360  ;;  %v1652_v33 = vmul.f32 0.00390625, %v374_v22 }
  0xe4   : > { %v375_v35 = vadd.f32 %v361_v21, %v345_v20 }
  0xe5   : > { %v454_v41 = vmul.f32 %v1652_v33, %v1652_v33 }
  0xe6   : > { %v1656_v43 = vmul.f32 0.00390625, %v375_v35 }
  0xe7   : > { %v1141_v23 = vpop.eup %1140 }
  0xe8   : > { %v1143_v27 = vpop.eup %1142  ;;  %v529_v29 = vmul.f32 %v1141_v23, %v475_v13  ;;  %v393_v30 = vpop.xlane.xlu1 %392  ;;  %vm535_vm0 = vweird.f32 %v1141_v23  ;;  %v455_v55 = vmul.f32 %v1656_v43, %v1656_v43 }
  0xe9   : > { %v391_v31 = vpop.xlane.xlu0 %390  ;;  %v519_v32 = vmul.f32 %v1143_v27, %v474_v14  ;;  %vm525_vm1 = vweird.f32 %v1143_v27  ;;  %vm536_vm4 = vmor %vm534_vm2, %vm535_vm0 }
  0xea   : > { %v530_v34 = vmul.f32 %v1141_v23, %v529_v29  ;;  %vm526_vm5 = vmor %vm524_vm3, %vm525_vm1 }
  0xeb   : > { %v415_v36 = vpop.xlane.xlu2 %414  ;;  %v520_v37 = vmul.f32 %v1143_v27, %v519_v32 }
  0xec   : > { %v430_v38 = vadd.f32 %v415_v36, %v391_v31  ;;  %v531_v39 = vmul.f32 0.5, %v530_v34 }
  0xed   : > { %v521_v40 = vmul.f32 0.5, %v520_v37 }
  0xee   : > { %v446_v42 = vmul.f32 0.00390625, %v430_v38  ;;  %v532_v44 = vsub.f32 1.5, %v531_v39 }
  0xef   : > { %v522_v46 = vsub.f32 1.5, %v521_v40 }
  0xf0   : > { %v462_v45 = vsub.f32 %v446_v42, %v454_v41  ;;  %v355_v47 = vpop.xlane.xlu1 %354  ;;  %v533_v49 = vmul.f32 %v1141_v23, %v532_v44 }
  0xf1   : > { %v417_v48 = vpop.xlane.xlu0 %416  ;;  %v523_v54 = vmul.f32 %v1143_v27, %v522_v46 }
  0xf2   : > { %v470_v52 = vadd.f32 1e-05, %v462_v45  ;;  %v431_v53 = vadd.f32 %v417_v48, %v393_v30  ;;  %v537_v59 = vsel %vm536_vm4, %v1141_v23, %v533_v49 }
  0xf3   : > { %v357_v58 = vpop.xlane.xlu2 %356  ;;  %v527_v4 = vsel %vm526_vm5, %v1143_v27, %v523_v54  ;;  %v587_v62 = vmul.f32 %v579_v51, %v537_v59  ;;  %v571_v5 = vmul.f32 %v563_v0, %v537_v59 }
  0xf4   : > { %1144 = vrsqrt.f32 %v470_v52  ;;  %v447_v61 = vmul.f32 0.00390625, %v431_v53  ;;  %v586_v63 = vmul.f32 %v578_v50, %v527_v4  ;;  %v570_v2 = vmul.f32 %v562_v60, %v527_v4 }
  0xf5   : > { %vm484_vm7 = vweird.f32 %v470_v52  ;;  %v559_v60 = vsub.f32 %v1580_v10, %v1656_v43 }
  0xf6   : > { %v463_v6 = vsub.f32 %v447_v61, %v455_v55  ;;  %v596_v7 = vpack.c.bf16 %v587_v62, %v586_v63  ;;  %v592_v12 = vpack.c.bf16 %v571_v5, %v570_v2  ;;  %v574_v55 = vsub.f32 %v1577_v9, %v1652_v33 }
  0xf8   : > { %v471_v13 = vadd.f32 1e-05, %v463_v6  ;;  %696 = vmatmul.bf16.vlgmr.msra.gmra.mxu2 %v596_v7  ;;  %773 = vmatmul.bf16.vlgmr.msra.gmra.mxu3 %v592_v12  ;;  %v373_v14 = vpop.xlane.xlu1 %372 }
  0xf9   : > { %v371_v15 = vpop.xlane.xlu0 %370  ;;  %v381_v21 = vadd.f32 %v373_v14, %v357_v58  ;;  %v558_v58 = vsub.f32 %v1573_v8, %v1652_v33 }
  0xfa   : > { %v1145_v20 = vpop.eup %1144  ;;  %1146 = vrsqrt.f32 %v471_v13  ;;  %v380_v3 = vadd.f32 %v371_v15, %v355_v47  ;;  %vm494_vm10 = vweird.f32 %v471_v13 }
  0xfb   : > { %v479_v1 = vmul.f32 %v1145_v20, %v470_v52  ;;  %v403_v56 = vpop.xlane.xlu2 %402  ;;  %v1670_v34 = vmul.f32 0.00390625, %v381_v21  ;;  %vm485_vm6 = vweird.f32 %v1145_v20  ;;  %v575_v52 = vsub.f32 %v1583_v11, %v1656_v43 }
  0xfc   : > { %v1668_v27 = vmul.f32 0.00390625, %v380_v3  ;;  %vm486_vm8 = vmor %vm484_vm7, %vm485_vm6 }
  0xfd   : > { %v480_v57 = vmul.f32 %v1145_v20, %v479_v1  ;;  %v461_v45 = vmul.f32 %v1670_v34, %v1670_v34 }
  0xfe   : > { %v460_v39 = vmul.f32 %v1668_v27, %v1668_v27  ;;  %v580_v21 = vsub.f32 %v1608_v19, %v1668_v27  ;;  %v565_v19 = vsub.f32 %v1600_v17, %v1670_v34 }
  0xff   : > { %v481_v22 = vmul.f32 0.5, %v480_v57 }
 0x100   : > { %v1147_v23 = vpop.eup %1146  ;;  %v427_v30 = vpop.xlane.xlu1 %426 }
 0x101   : > { %v489_v29 = vmul.f32 %v1147_v23, %v471_v13  ;;  %v405_v31 = vpop.xlane.xlu0 %404  ;;  %v482_v32 = vsub.f32 1.5, %v481_v22  ;;  %v436_v35 = vadd.f32 %v427_v30, %v403_v56  ;;  %vm495_vm9 = vweird.f32 %v1147_v23 }
 0x102   : > { %vm496_vm11 = vmor %vm494_vm10, %vm495_vm9 }
 0x103   : > { %v490_v36 = vmul.f32 %v1147_v23, %v489_v29  ;;  %v429_v37 = vpop.xlane.xlu2 %428  ;;  %v452_v38 = vmul.f32 0.00390625, %v436_v35  ;;  %v483_v41 = vmul.f32 %v1145_v20, %v482_v32  ;;  %v581_v35 = vsub.f32 %v1605_v18, %v1670_v34 }
 0x104   : > { %v437_v40 = vadd.f32 %v429_v37, %v405_v31 }
 0x105   : > { %v491_v42 = vmul.f32 0.5, %v490_v36  ;;  %v468_v44 = vsub.f32 %v452_v38, %v460_v39  ;;  %v487_v50 = vsel %vm486_vm8, %v1145_v20, %v483_v41  ;;  %v564_v36 = vsub.f32 %v1597_v16, %v1668_v27 }
 0x106   : > { %v453_v46 = vmul.f32 0.00390625, %v437_v40  ;;  %v582_v61 = vmul.f32 %v574_v55, %v487_v50  ;;  %v566_v62 = vmul.f32 %v558_v58, %v487_v50 }
 0x107   : > { %v492_v47 = vsub.f32 1.5, %v491_v42  ;;  %v476_v48 = vadd.f32 1e-05, %v468_v44 }
 0x108   : > { %v469_v49 = vsub.f32 %v453_v46, %v461_v45  ;;  %v349_v51 = vpop.xlane.xlu1 %348 }
 0x109   : > { %v347_v53 = vpop.xlane.xlu0 %346  ;;  %v493_v54 = vmul.f32 %v1147_v23, %v492_v47  ;;  %1148 = vrsqrt.f32 %v476_v48  ;;  %vm544_vm13 = vweird.f32 %v476_v48 }
 0x10a   : > { %v477_v59 = vadd.f32 1e-05, %v469_v49 }
 0x10b   : > { %v497_v0 = vsel %vm496_vm11, %v1147_v23, %v493_v54  ;;  %v363_v5 = vpop.xlane.xlu2 %362 }
 0x10c   : > { %1150 = vrsqrt.f32 %v477_v59  ;;  %v583_v4 = vmul.f32 %v575_v52, %v497_v0  ;;  %v567_v63 = vmul.f32 %v559_v60, %v497_v0  ;;  %v376_v14 = vadd.f32 %v363_v5, %v347_v53 }
 0x10d   : > { %vm554_vm0 = vweird.f32 %v477_v59 }
 0x10e   : > { %v594_v2 = vpack.c.bf16 %v583_v4, %v582_v61  ;;  %v590_v9 = vpack.c.bf16 %v567_v63, %v566_v62  ;;  %v1684_v3 = vmul.f32 0.00390625, %v376_v14 }
 0x10f   : > { %v1149_v6 = vpop.eup %1148 }
 0x110   : > { %686 = vmatmul.bf16.vlgmr.msra.gmra.mxu0 %v594_v2  ;;  %763 = vmatmul.bf16.vlgmr.msra.gmra.mxu1 %v590_v9  ;;  %v539_v8 = vmul.f32 %v1149_v6, %v476_v48  ;;  %v395_v33 = vpop.xlane.xlu1 %394  ;;  %vm545_vm12 = vweird.f32 %v1149_v6  ;;  %v456_v41 = vmul.f32 %v1684_v3, %v1684_v3  ;;  %v576_v9 = vsub.f32 %v1627_v26, %v1684_v3 }
 0x111   : > { %v365_v7 = vpop.xlane.xlu0 %364  ;;  %vm546_vm15 = vmor %vm544_vm13, %vm545_vm12  ;;  %v560_v5 = vsub.f32 %v1624_v25, %v1684_v3 }
 0x112   : > { %v1151_v12 = vpop.eup %1150  ;;  %v540_v11 = vmul.f32 %v1149_v6, %v539_v8  ;;  %v377_v10 = vadd.f32 %v365_v7, %v349_v51 }
 0x113   : > { %v549_v13 = vmul.f32 %v1151_v12, %v477_v59  ;;  %v397_v1 = vpop.xlane.xlu2 %396  ;;  %vm555_vm14 = vweird.f32 %v1151_v12 }
 0x114   : > { %v541_v43 = vmul.f32 0.5, %v540_v11  ;;  %v1686_v57 = vmul.f32 0.00390625, %v377_v10  ;;  %vm556_vm1 = vmor %vm554_vm0, %vm555_vm14 }
 0x115   : > { %v550_v15 = vmul.f32 %v1151_v12, %v549_v13 }
 0x116   : > { %v542_v56 = vsub.f32 1.5, %v541_v43  ;;  %v457_v40 = vmul.f32 %v1686_v57, %v1686_v57  ;;  %v577_v62 = vsub.f32 %v1635_v28, %v1686_v57  ;;  %v561_v63 = vsub.f32 %v1621_v24, %v1686_v57  ;;  %v1139_v24 = vld [vmem:[%s1760_s4] ss:$0 sm:$0xff] }
 0x117   : > { %v551_v20 = vmul.f32 0.5, %v550_v15 }
 0x118   : > { %v421_v22 = vpop.xlane.xlu1 %420  ;;  %v543_v29 = vmul.f32 %v1149_v6, %v542_v56 }
 0x119   : > { %v419_v23 = vpop.xlane.xlu0 %418  ;;  %v552_v30 = vsub.f32 1.5, %v551_v20  ;;  %v433_v31 = vadd.f32 %v421_v22, %v397_v1 }
 0x11a   : > { %v432_v32 = vadd.f32 %v419_v23, %v395_v33  ;;  %v547_v37 = vsel %vm546_vm15, %v1149_v6, %v543_v29 }
 0x11b   : > { %v553_v38 = vmul.f32 %v1151_v12, %v552_v30  ;;  %v449_v39 = vmul.f32 0.00390625, %v433_v31  ;;  %v588_v18 = vmul.f32 %v580_v21, %v547_v37  ;;  %v572_v45 = vmul.f32 %v564_v36, %v547_v37 }
 0x11c   : > { %v448_v42 = vmul.f32 0.00390625, %v432_v32 }
 0x11d   : > { %v557_v44 = vsel %vm556_vm1, %v1151_v12, %v553_v38  ;;  %v465_v46 = vsub.f32 %v449_v39, %v457_v40 }
 0x11e   : > { %v464_v16 = vsub.f32 %v448_v42, %v456_v41  ;;  %v589_v27 = vmul.f32 %v581_v35, %v557_v44  ;;  %v573_v47 = vmul.f32 %v565_v19, %v557_v44 }
 0x11f   : > { %v473_v48 = vadd.f32 1e-05, %v465_v46 }
 0x120   : > { %v472_v49 = vadd.f32 1e-05, %v464_v16  ;;  %v597_v50 = vpack.c.bf16 %v589_v27, %v588_v18  ;;  %v593_v17 = vpack.c.bf16 %v573_v47, %v572_v45 }
 0x121   : > { %1152 = vrsqrt.f32 %v473_v48  ;;  %vm514_vm4 = vweird.f32 %v473_v48 }
 0x122   : > { %701 = vmatmul.bf16.gmra.mxu2 %v597_v50  ;;  %778 = vmatmul.bf16.gmra.mxu3 %v593_v17  ;;  %1154 = vrsqrt.f32 %v472_v49  ;;  %vm504_vm5 = vweird.f32 %v472_v49 }
 0x127   : > { %v1153_v34 = vpop.eup %1152 }
 0x128   : > { %v1155_v51 = vpop.eup %1154  ;;  %v509_v53 = vmul.f32 %v1153_v34, %v473_v48  ;;  %vm515_vm2 = vweird.f32 %v1153_v34 }
 0x129   : > { %v499_v54 = vmul.f32 %v1155_v51, %v472_v49  ;;  %vm505_vm3 = vweird.f32 %v1155_v51  ;;  %vm516_vm6 = vmor %vm514_vm4, %vm515_vm2 }
 0x12a   : > { %v510_v55 = vmul.f32 %v1153_v34, %v509_v53  ;;  %vm506_vm7 = vmor %vm504_vm5, %vm505_vm3 }
 0x12b   : > { %v500_v58 = vmul.f32 %v1155_v51, %v499_v54 }
 0x12c   : > { %v511_v59 = vmul.f32 0.5, %v510_v55 }
 0x12d   : > { %v501_v52 = vmul.f32 0.5, %v500_v58 }
 0x12e   : > { %v512_v60 = vsub.f32 1.5, %v511_v59 }
 0x12f   : > { %v502_v0 = vsub.f32 1.5, %v501_v52 }
 0x130   : > { %v513_v61 = vmul.f32 %v1153_v34, %v512_v60 }
 0x131   : > { %v503_v4 = vmul.f32 %v1155_v51, %v502_v0 }
 0x132   : > { %v517_v2 = vsel %vm516_vm6, %v1153_v34, %v513_v61 }
 0x133   : > { %v507_v6 = vsel %vm506_vm7, %v1155_v51, %v503_v4  ;;  %v585_v8 = vmul.f32 %v577_v62, %v517_v2  ;;  %v569_v33 = vmul.f32 %v561_v63, %v517_v2 }
 0x134   : > { %v584_v7 = vmul.f32 %v576_v9, %v507_v6  ;;  %v568_v12 = vmul.f32 %v560_v5, %v507_v6 }
 0x136   : > { %v595_v11 = vpack.c.bf16 %v585_v8, %v584_v7  ;;  %v591_v13 = vpack.c.bf16 %v569_v33, %v568_v12 }
 0x138   : > { %691 = vmatmul.bf16.gmra.mxu0 %v595_v11  ;;  %768 = vmatmul.bf16.gmra.mxu1 %v591_v13 }
 0x17b   : > { %v697_v28 = vpop.f32.mrf.mxu2  ;;  %v774_v14 = vpop.f32.mrf.mxu3 }
 0x17c   : > { %v775_v26 = vadd.f32 %v774_v14, %v697_v28 }
 0x17e   : > { %v792_v10 = vadd.f32 %v1139_v24, %v775_v26 }
 0x180   : > { %800 = vst [vmem:[%s1712_s11 + $0x20] sm:$0xff] %v792_v10 }
 0x183   : > { %v699_v25 = vpop.f32.mrf.mxu2  ;;  %v776_v43 = vpop.f32.mrf.mxu3 }
 0x184   : > { %v777_v15 = vadd.f32 %v776_v43, %v699_v25 }
 0x186   : > { %v793_v20 = vadd.f32 %v1139_v24, %v777_v15 }
 0x188   : > { %801 = vst [vmem:[%s1712_s11 + $0x28] sm:$0xff] %v793_v20 }
 0x18d   : > { %v687_v1 = vpop.f32.mrf.mxu0  ;;  %v764_v56 = vpop.f32.mrf.mxu1 }
 0x18e   : > { %v765_v3 = vadd.f32 %v764_v56, %v687_v1 }
 0x190   : > { %v788_v57 = vadd.f32 %v1139_v24, %v765_v3 }
 0x192   : > { %796 = vst [vmem:[%s1712_s11] sm:$0xff] %v788_v57 }
 0x195   : > { %v689_v21 = vpop.f32.mrf.mxu0  ;;  %v766_v22 = vpop.f32.mrf.mxu1 }
 0x196   : > { %v767_v23 = vadd.f32 %v766_v22, %v689_v21 }
 0x198   : > { %v789_v29 = vadd.f32 %v1139_v24, %v767_v23 }
 0x19a   : > { %797 = vst [vmem:[%s1712_s11 + $0x8] sm:$0xff] %v789_v29 }
 0x1a5   : > { %v702_v30 = vpop.f32.mrf.mxu2  ;;  %v779_v31 = vpop.f32.mrf.mxu3 }
 0x1a6   : > { %v780_v32 = vadd.f32 %v779_v31, %v702_v30 }
 0x1a8   : > { %v794_v35 = vadd.f32 %v1139_v24, %v780_v32 }
 0x1aa   : > { %802 = vst [vmem:[%s1712_s11 + $0x30] sm:$0xff] %v794_v35 }
 0x1ad   : > { %v704_v36 = vpop.f32.mrf.mxu2  ;;  %v781_v37 = vpop.f32.mrf.mxu3 }
 0x1ae   : > { %v782_v38 = vadd.f32 %v781_v37, %v704_v36 }
 0x1b0   : > { %v795_v19 = vadd.f32 %v1139_v24, %v782_v38 }
 0x1b2   : > { %803 = vst [vmem:[%s1712_s11 + $0x38] sm:$0xff] %v795_v19 }
 0x1b5   : > { %v692_v39 = vpop.f32.mrf.mxu0  ;;  %v769_v40 = vpop.f32.mrf.mxu1 }
 0x1b6   : > { %v770_v41 = vadd.f32 %v769_v40, %v692_v39 }
 0x1b8   : > { %v790_v42 = vadd.f32 %v1139_v24, %v770_v41 }
 0x1ba   : > { %798 = vst [vmem:[%s1712_s11 + $0x10] sm:$0xff] %v790_v42 }
 0x1bd   : > { %v694_v44 = vpop.f32.mrf.mxu0  ;;  %v771_v18 = vpop.f32.mrf.mxu1 }
 0x1be   : > { %v772_v45 = vadd.f32 %v771_v18, %v694_v44 }
 0x1c0   : > { %v791_v46 = vadd.f32 %v1139_v24, %v772_v45 }
 0x1c2   : > { %799 = vst [vmem:[%s1712_s11 + $0x18] sm:$0xff] %v791_v46 }
 0x1c3   : > { %1303 = shalt.err (!%p1300_p9)
}
 0x1c4   : > { %s1363_s0 = smov 128   ;;  %s1364_s20 = smov 8  }
 0x1c5   : > { %1072 = dma.vmem_to_hbm [thread:$0]  (%p1461_p3), %s818_s6, 1024, %s820_s7, %s805_s8, %s1363_s0, %s1363_s0, %s1364_s20  }
 0x1c6 PF: > { %s834_s14 = sand.u32 1, %s1342_s18   ;;  %p1781_p12 = scmp.ge.s32.totalorder %s1354_s21, 2 }
 0x1c7   : > { %s835_s2 = scalar_lea.sflag [#allocation4], %s834_s14 }
 0x1c8   : > { %p1089_p13 = pnand %p1781_p12, %p1430_p6 }
 0x1ca   : > { %p1090_p0 = pneg %p1089_p13 }
 0x1cc   : > { %1337 = dma.done.wait (%p1090_p0), %s835_s2, 1024  }
 0x1cd   : > { %1339 = vsyncadd (%p1090_p0), %s835_s2, 4294966272  ;;  %s1782_s21 = sld [smem:[#allocation17_spill]]  ;;  %s1785_s18 = smov %s1346_s19 }
 0x1ce   : > { %s1783_s29 = sld [smem:[#allocation16_spill]] }
 0x1cf   : > { %s1784_s20 = sld [smem:[#allocation18_spill]] }
 0x1d3   : > { %p22_p5 = scmp.ge.s32.totalorder %s1782_s21, 4  }
 0x1d4   : > { %s1786_s19 = smov %s1783_s29 }
 0x1d5   :  { %24 = sbr.rel (!%p22_p5) target bundleno = 12 (0xc), region = 106 }
 0x1da   :  { %841 = vsyncpa [#allocation3], 1 }
 0x1db   :  { %843 = vsyncpa [#allocation3 + $0x1], 1 }
 0x1dc   :  { %844 = vsyncpa [#allocation6], 1 }
 0x1dd   :  { %846 = vsyncpa [#allocation6 + $0x1], 1 }
 0x1de   :  { %847 = vsyncpa [#allocation9], 1 }
 0x1df   :  { %848 = vsyncpa [#allocation4], 1 }
 0x1e0   :  { %850 = vsyncpa [#allocation4 + $0x1], 1 }

</bundles_post_ra>
